<compile_context>
chip_gen: v6e
topology: v6e:2x2x1
jax: 0.10.0
libtpu: 0.0.40
codegen_flags: <defaults>
</compile_context>

<pallas_src>
import jax
import jax.numpy as jnp
import numpy as np
from jax.experimental import pallas as pl
from jax.experimental.pallas import tpu as pltpu


def _vmem_capacity_bytes() -> int:
    try:
        return int(pltpu.get_tpu_info().vmem_capacity_bytes)
    except Exception:
        return 64 * 1024 * 1024  # conservative default (v7x-sized)


def _make_sobel_kernel(h: int, w: int):
    p = h * w

    def kernel(mask_ref, x_ref, o_ref):
        x = x_ref[...].astype(jnp.float32)          # (TN, P)
        tn = x.shape[0]
        not_first_col = mask_ref[0:1, :]            # 1.0 where j != 0
        not_last_col = mask_ref[1:2, :]             # 1.0 where j != W-1

        def shift_hi(y, d):
            # out[:, q] = y[:, q - d], zero-filled for q < d
            if d >= p:
                return jnp.zeros_like(y)
            return jnp.concatenate(
                [jnp.zeros((tn, d), jnp.float32), y[:, : p - d]], axis=1)

        def shift_lo(y, d):
            # out[:, q] = y[:, q + d], zero-filled for q >= P - d
            if d >= p:
                return jnp.zeros_like(y)
            return jnp.concatenate(
                [y[:, d:], jnp.zeros((tn, d), jnp.float32)], axis=1)

        # Horizontal (within-row) taps. The column masks provide the zero
        # padding at j == 0 / j == W-1 (a flat shift by 1 would otherwise wrap
        # the neighbouring row's border pixel in).
        if w > 1:
            left = shift_hi(x, 1) * not_first_col    # x[i, j-1]
            right = shift_lo(x, 1) * not_last_col    # x[i, j+1]
        else:
            left = jnp.zeros_like(x)
            right = jnp.zeros_like(x)

        hx = right - left                            # row kernel [-1, 0, 1]
        hs = left + 2.0 * x + right                  # row kernel [ 1, 2, 1]

        # Vertical (across-row) taps: a flat shift by W maps (i, j) -> (i -/+ 1, j)
        # exactly for every j; the zero fill is the top/bottom zero padding.
        gx = shift_hi(hx, w) + 2.0 * hx + shift_lo(hx, w)   # col kernel [1,2,1]^T
        gy = shift_lo(hs, w) - shift_hi(hs, w)              # col kernel [-1,0,1]^T

        o_ref[...] = jnp.sqrt(gx * gx + gy * gy).astype(o_ref.dtype)

    return kernel


def sobel(x):
    """x: (B, C, H, W) -> (B, C, H, W) Sobel gradient magnitude (zero padding)."""
    B, C, H, W = x.shape
    N = B * C
    P = H * W

    # Free, contiguous reshape: spatial dims flattened onto the lane axis.
    xf = x.reshape(N, P)

    # Column-boundary masks (tiny compile-time constants, shape (2, P)).
    col = np.arange(P, dtype=np.int64) % W
    masks = jnp.asarray(np.stack([col != 0, col != W - 1]).astype(np.float32))

    # --- block-size selection from this generation's VMEM -------------------
    # Working set per grid step ~ LIVE * TN * P * 4 bytes:
    #   double-buffered input + output blocks (4x) plus ~6-8 live f32
    #   temporaries inside the kernel.
    LIVE = 12
    vmem_cap = _vmem_capacity_bytes()      # 128 MiB on v5e/v6e, 64 MiB on v7x
    budget = vmem_cap // 2
    row_bytes = P * 4

    if N <= 8:
        TN = N                              # full second-minor dim (always legal)
    else:
        TN = max(8, (budget // (LIVE * row_bytes)) // 8 * 8)
        # keep the grid at >= 2 steps so both v7x TensorCores get work
        TN = min(TN, max(8, (N // 2) // 8 * 8))
        TN = min(TN, (N + 7) // 8 * 8)
    TN = max(1, TN)

    need = LIVE * TN * row_bytes + (4 << 20)
    vmem_limit = int(min(vmem_cap * 3 // 4, max(budget, need)))

    grid = (pl.cdiv(N, TN),)

    out = pl.pallas_call(
        _make_sobel_kernel(H, W),
        out_shape=jax.ShapeDtypeStruct((N, P), x.dtype),
        grid_spec=pl.GridSpec(
            grid=grid,
            in_specs=[
                pl.BlockSpec((2, P), lambda n: (0, 0)),     # boundary masks
                pl.BlockSpec((TN, P), lambda n: (n, 0)),    # TN images / step
            ],
            out_specs=pl.BlockSpec((TN, P), lambda n: (n, 0)),
        ),
        compiler_params=pltpu.CompilerParams(
            dimension_semantics=("parallel",),
            vmem_limit_bytes=vmem_limit,
        ),
    )(masks, xf)

    return out.reshape(B, C, H, W)


def _sobel_reference(x):
    # plain-JAX reference with identical semantics (sanity check)
    B, C, H, W = x.shape
    xp = jnp.pad(x, ((0, 0), (0, 0), (1, 1), (1, 1)))

    def tap(a, b):
        return xp[:, :, a:a + H, b:b + W]

    gx = (-tap(0, 0) + tap(0, 2)
          - 2.0 * tap(1, 0) + 2.0 * tap(1, 2)
          - tap(2, 0) + tap(2, 2))
    gy = (-tap(0, 0) - 2.0 * tap(0, 1) - tap(0, 2)
          + tap(2, 0) + 2.0 * tap(2, 1) + tap(2, 2))
    return jnp.sqrt(gx * gx + gy * gy)


if __name__ == "__main__":
    key = jax.random.PRNGKey(0)
    x = jax.random.normal(key, (2, 4, 16, 16), dtype=jnp.float32)

    y = sobel(x)
    jax.block_until_ready(y)

    y_ref = _sobel_reference(x)
    assert y.shape == (2, 4, 16, 16)
    assert y.dtype == jnp.float32
    assert jnp.allclose(y, y_ref, atol=1e-4, rtol=1e-4), \
        float(jnp.max(jnp.abs(y - y_ref)))

    print("KERNEL_OK")
</pallas_src>

<mosaic_0001>
module attributes {stable_mosaic.version = 11 : i64} {
  func.func @kernel(%arg0: i32, %arg1: memref<2x256xf32, #tpu.memory_space<vmem>>, %arg2: memref<8x256xf32, #tpu.memory_space<vmem>>, %arg3: memref<8x256xf32, #tpu.memory_space<vmem>>) attributes {dimension_semantics = [#tpu.dimension_semantics<parallel>], iteration_bounds = array<i64: 1>, scalar_prefetch = 0 : i64, scratch_operands = 0 : i64, tpu.core_type = #tpu.core_type<tc>, window_params = [{pipeline_mode = #tpu.pipeline_mode<synchronous>, transform_indices = @transform_0, window_bounds = array<i64: 2, 256>}, {transform_indices = @transform_1, window_bounds = array<i64: 8, 256>}, {transform_indices = @transform_2, window_bounds = array<i64: 8, 256>}]} {
    %c0 = arith.constant 0 : index
    %c0_0 = arith.constant 0 : index
    %0 = vector.load %arg2[%c0, %c0_0] : memref<8x256xf32, #tpu.memory_space<vmem>>, vector<8x256xf32>
    %c0_1 = arith.constant 0 : index
    %c0_2 = arith.constant 0 : index
    %1 = vector.load %arg1[%c0_1, %c0_2] : memref<2x256xf32, #tpu.memory_space<vmem>>, vector<1x256xf32>
    %c1 = arith.constant 1 : index
    %c0_3 = arith.constant 0 : index
    %2 = vector.load %arg1[%c1, %c0_3] : memref<2x256xf32, #tpu.memory_space<vmem>>, vector<1x256xf32>
    %cst = arith.constant 0.000000e+00 : f32
    %3 = vector.broadcast %cst : f32 to vector<8x1xf32>
    %4 = vector.extract_strided_slice %0 {offsets = [0, 0], sizes = [8, 255], strides = [1, 1]} : vector<8x256xf32> to vector<8x255xf32>
    %5 = tpu.concatenate %3, %4 in 1 : vector<8x1xf32>, vector<8x255xf32> -> vector<8x256xf32>
    %6 = vector.broadcast %1 : vector<1x256xf32> to vector<8x256xf32>
    %7 = arith.mulf %5, %6 : vector<8x256xf32>
    %8 = vector.extract_strided_slice %0 {offsets = [0, 1], sizes = [8, 255], strides = [1, 1]} : vector<8x256xf32> to vector<8x255xf32>
    %cst_4 = arith.constant 0.000000e+00 : f32
    %9 = vector.broadcast %cst_4 : f32 to vector<8x1xf32>
    %10 = tpu.concatenate %8, %9 in 1 : vector<8x255xf32>, vector<8x1xf32> -> vector<8x256xf32>
    %11 = vector.broadcast %2 : vector<1x256xf32> to vector<8x256xf32>
    %12 = arith.mulf %10, %11 : vector<8x256xf32>
    %13 = arith.subf %12, %7 : vector<8x256xf32>
    %cst_5 = arith.constant 2.000000e+00 : f32
    %14 = vector.broadcast %cst_5 : f32 to vector<8x256xf32>
    %15 = arith.mulf %14, %0 : vector<8x256xf32>
    %16 = arith.addf %7, %15 : vector<8x256xf32>
    %17 = arith.addf %16, %12 : vector<8x256xf32>
    %cst_6 = arith.constant 0.000000e+00 : f32
    %18 = vector.broadcast %cst_6 : f32 to vector<8x16xf32>
    %19 = vector.extract_strided_slice %13 {offsets = [0, 0], sizes = [8, 240], strides = [1, 1]} : vector<8x256xf32> to vector<8x240xf32>
    %20 = tpu.concatenate %18, %19 in 1 : vector<8x16xf32>, vector<8x240xf32> -> vector<8x256xf32>
    %cst_7 = arith.constant 2.000000e+00 : f32
    %21 = vector.broadcast %cst_7 : f32 to vector<8x256xf32>
    %22 = arith.mulf %21, %13 : vector<8x256xf32>
    %23 = arith.addf %20, %22 : vector<8x256xf32>
    %24 = vector.extract_strided_slice %13 {offsets = [0, 16], sizes = [8, 240], strides = [1, 1]} : vector<8x256xf32> to vector<8x240xf32>
    %cst_8 = arith.constant 0.000000e+00 : f32
    %25 = vector.broadcast %cst_8 : f32 to vector<8x16xf32>
    %26 = tpu.concatenate %24, %25 in 1 : vector<8x240xf32>, vector<8x16xf32> -> vector<8x256xf32>
    %27 = arith.addf %23, %26 : vector<8x256xf32>
    %28 = vector.extract_strided_slice %17 {offsets = [0, 16], sizes = [8, 240], strides = [1, 1]} : vector<8x256xf32> to vector<8x240xf32>
    %cst_9 = arith.constant 0.000000e+00 : f32
    %29 = vector.broadcast %cst_9 : f32 to vector<8x16xf32>
    %30 = tpu.concatenate %28, %29 in 1 : vector<8x240xf32>, vector<8x16xf32> -> vector<8x256xf32>
    %cst_10 = arith.constant 0.000000e+00 : f32
    %31 = vector.broadcast %cst_10 : f32 to vector<8x16xf32>
    %32 = vector.extract_strided_slice %17 {offsets = [0, 0], sizes = [8, 240], strides = [1, 1]} : vector<8x256xf32> to vector<8x240xf32>
    %33 = tpu.concatenate %31, %32 in 1 : vector<8x16xf32>, vector<8x240xf32> -> vector<8x256xf32>
    %34 = arith.subf %30, %33 : vector<8x256xf32>
    %35 = arith.mulf %27, %27 : vector<8x256xf32>
    %36 = arith.mulf %34, %34 : vector<8x256xf32>
    %37 = arith.addf %35, %36 : vector<8x256xf32>
    %38 = math.sqrt %37 : vector<8x256xf32>
    %c0_11 = arith.constant 0 : index
    %c0_12 = arith.constant 0 : index
    %39 = vector.load %arg3[%c0_11, %c0_12] : memref<8x256xf32, #tpu.memory_space<vmem>>, vector<8x256xf32>
    tpu.vector_store %arg3[%c0_11, %c0_12], %38 {strides = array<i32>} : memref<8x256xf32, #tpu.memory_space<vmem>>, vector<8x256xf32>,
    return
  }
  func.func @transform_0(%arg0: i32) -> (i32, i32) {
    %c0_i32 = arith.constant 0 : i32
    %c0_i32_0 = arith.constant 0 : i32
    %c0_i32_1 = arith.constant 0 : i32
    return %c0_i32, %c0_i32_0 : i32, i32
  }
  func.func @transform_1(%arg0: i32) -> (i32, i32) {
    %c0_i32 = arith.constant 0 : i32
    %c0_i32_0 = arith.constant 0 : i32
    return %arg0, %c0_i32 : i32, i32
  }
  func.func @transform_2(%arg0: i32) -> (i32, i32) {
    %c0_i32 = arith.constant 0 : i32
    %c0_i32_0 = arith.constant 0 : i32
    return %arg0, %c0_i32 : i32, i32
  }
}

</mosaic_0001>

<bundles_post_ra>
// kernel: tpu_custom_call.1
= control target key start
LH: loop header
LB: loop body
LE: loop exit
PB: predicated region body
PF: predicated region fallthrough
CT: control target
= control target key end

     0   :  { %7 = vsyncpa [#allocation3], 0  ;;  %s295_s0 = inlined_call_operand.hbm [shape: f32[2,256], index: 0, kind: input, shape index: {}]   ;;  %s296_s1 = inlined_call_operand.hbm [shape: f32[8,256], index: 1, kind: input, shape index: {}]   ;;  %s297_s2 = inlined_call_operand.hbm [shape: f32[8,256], index: 2, kind: output, shape index: {}]  }
   0x1   :  { %8 = vsyncpa [#allocation6], 0 }
   0x2   :  { %9 = vsyncpa [#allocation4], 0  ;;  %s256_s9 = smov [#allocation2]   ;;  %s257_s11 = smov [#allocation5]  }
   0x3   :  { %s16_s10 = sshll.u32 %s256_s9, 4  ;;  %s26_s12 = sshll.u32 %s257_s11, 4  ;;  %s17_s10 = int_to_ptr.vmem [resolvable:$true] %s16_s10  ;;  %s27_s12 = int_to_ptr.vmem [resolvable:$true] %s26_s12 }
   0x4   :  { %s198_s13 = scalar_lea.vmem %s17_s10, 64  ;;  %p203_p1 = scmp.lt.s32.totalorder %s17_s10, %s17_s10 }
   0x5   :  { %p199_p0 = scmp.ne.s32.totalorder %s17_s10, %s198_s13  ;;  %p204_p2 = scmp.lt.s32.totalorder %s198_s13, %s198_s13 }
   0x7   :  { %p205_p3 = por %p204_p2, %p203_p1 }
   0x9   :  { %p206_p4 = pnand %p205_p3, %p199_p0 }
   0xb   :  { %209 = shalt.err (!%p206_p4)
}
   0xc   :  { %19 = dma.hbm_to_vmem [thread:$0]  %s295_s0, 64, %s17_s10, [#allocation3]  }
   0xd   :  { %s218_s16 = scalar_lea.vmem %s27_s12, 256  ;;  %p223_p6 = scmp.lt.s32.totalorder %s27_s12, %s27_s12 }
   0xe   :  { %p219_p5 = scmp.ne.s32.totalorder %s27_s12, %s218_s16  ;;  %p224_p7 = scmp.lt.s32.totalorder %s218_s16, %s218_s16 }
  0x10   :  { %p225_p8 = por %p224_p7, %p223_p6 }
  0x12   :  { %p226_p9 = pnand %p225_p8, %p219_p5 }
  0x14   :  { %229 = shalt.err (!%p226_p9)
}
  0x15   :  { %29 = dma.hbm_to_vmem [thread:$0]  %s296_s1, 256, %s27_s12, [#allocation6]  }
  0x16   :  { %250 = dma.done.wait [#allocation3], 64  }
  0x17   :  { %251 = vsyncadd [#allocation3], 4294967232 }
  0x18   :  { %252 = dma.done.wait [#allocation6], 256  }
  0x19   :  { %253 = vsyncadd [#allocation6], 4294967040  ;;  %v36_v0 = vld [vmem:[#allocation5] sm:$0xff]  ;;  %s258_s19 = smov 127   ;;  %s259_s20 = smov 1   ;;  %v37_v1 = vld [vmem:[#allocation5 + $0x8] sm:$0xff]  ;;  %v53_v2 = vlaneseq }
  0x1a   :  { %65 = vrot.lane.b32.xlu1 %v36_v0, %s258_s19  ;;  %43 = vrot.lane.b32.xlu0 %v36_v0, %s259_s20  ;;  %v38_v6 = vld [vmem:[#allocation2] ss:$2 sm:$0x3]  ;;  %v40_v7 = vld [vmem:[#allocation2 + $0x1] ss:$2 sm:$0x3] }
  0x1b   :  { %v54_v3 = vshrl.u32 %v53_v2, 7  ;;  %vm47_vm0 = vcmask 7168   ;;  %vm69_vm1 = vcmask 1039360   ;;  %v90_v24 = vmul.f32 2.0, %v37_v1  ;;  %s260_s0 = smov 16   ;;  %s261_s1 = smov 112  }
  0x1c   :  { %v89_v27 = vmul.f32 2.0, %v36_v0  ;;  %vm101_vm2 = vcmask 130048   ;;  %vm114_vm3 = vcmask 916480   ;;  %s262_s21 = smov [#allocation7]  }
  0x1d   :  { %v55_v4 = vsub.s32 0, %v54_v3  ;;  %v59_v5 = vsub.s32 1, %v54_v3  ;;  %s169_s22 = sshll.u32 %s262_s21, 4  ;;  %s170_s22 = int_to_ptr.vmem [resolvable:$true] %s169_s22 }
  0x1e   :  { %67 = vrot.lane.b32.xlu1 %v37_v1, %s258_s19  ;;  %45 = vrot.lane.b32.xlu0 %v37_v1, %s259_s20  ;;  %s230_s23 = scalar_lea.vmem %s170_s22, 256  ;;  %p235_p11 = scmp.lt.s32.totalorder %s170_s22, %s170_s22 }
  0x1f   :  { %v56_v10 = vrot.slane %v38_v6, %v55_v4  ;;  %v78_v11 = vrot.slane %v40_v7, %v55_v4  ;;  %v82_v12 = vrot.slane %v40_v7, %v59_v5  ;;  %v60_v13 = vrot.slane %v38_v6, %v59_v5  ;;  %p231_p10 = scmp.ne.s32.totalorder %s170_s22, %s230_s23  ;;  %p236_p12 = scmp.lt.s32.totalorder %s230_s23, %s230_s23 }
  0x21   :  { %p237_p13 = por %p236_p12, %p235_p11 }
  0x23   :  { %p238_p0 = pnand %p237_p13, %p231_p10 }
  0x8c   :  { %v66_v8 = vpop.permute.xlu1 %65  ;;  %v44_v9 = vpop.permute.xlu0 %43 }
  0x8d   :  { %v51_v14 = vsel %vm47_vm0, 0.0, %v44_v9 }
  0x8e   :  { %v63_v20 = vmul.f32 %v56_v10, %v51_v14 }
  0x90   :  { %v68_v15 = vpop.permute.xlu1 %67  ;;  %v46_v16 = vpop.permute.xlu0 %45  ;;  %v91_v29 = vadd.f32 %v89_v27, %v63_v20 }
  0x91   :  { %v70_v17 = vsel %vm69_vm1, %v66_v8, %v68_v15  ;;  %v73_v18 = vsel %vm69_vm1, %v68_v15, 0.0  ;;  %v48_v19 = vsel %vm47_vm0, %v44_v9, %v46_v16 }
  0x92   :  { %v85_v21 = vmul.f32 %v78_v11, %v70_v17  ;;  %v86_v22 = vmul.f32 %v82_v12, %v73_v18  ;;  %v64_v23 = vmul.f32 %v60_v13, %v48_v19 }
  0x94   :  { %v87_v25 = vsub.f32 %v85_v21, %v63_v20  ;;  %v88_v26 = vsub.f32 %v86_v22, %v64_v23  ;;  %v92_v28 = vadd.f32 %v90_v24, %v64_v23  ;;  %v93_v31 = vadd.f32 %v91_v29, %v85_v21 }
  0x96   :  { %97 = vrot.lane.b32.xlu0 %v87_v25, %s260_s0  ;;  %99 = vrot.lane.b32.xlu1 %v88_v26, %s260_s0  ;;  %v94_v30 = vadd.f32 %v92_v28, %v86_v22  ;;  %v106_v38 = vmul.f32 2.0, %v87_v25  ;;  %v107_v39 = vmul.f32 2.0, %v88_v26 }
  0x9a   :  { %110 = vrot.lane.b32.xlu0 %v87_v25, %s261_s1  ;;  %112 = vrot.lane.b32.xlu1 %v88_v26, %s261_s1 }
  0x9e   :  { %125 = vrot.lane.b32.xlu1 %v94_v30, %s261_s1  ;;  %123 = vrot.lane.b32.xlu0 %v93_v31, %s261_s1 }
  0xa2   :  { %133 = vrot.lane.b32.xlu1 %v94_v30, %s260_s0  ;;  %131 = vrot.lane.b32.xlu0 %v93_v31, %s260_s0 }
 0x108   :  { %v100_v32 = vpop.permute.xlu1 %99  ;;  %v98_v33 = vpop.permute.xlu0 %97 }
 0x109   :  { %v102_v36 = vsel %vm101_vm2, %v98_v33, %v100_v32  ;;  %v105_v37 = vsel %vm101_vm2, 0.0, %v98_v33 }
 0x10a   :  { %v108_v44 = vadd.f32 %v106_v38, %v105_v37  ;;  %v109_v45 = vadd.f32 %v107_v39, %v102_v36 }
 0x10c   :  { %v113_v34 = vpop.permute.xlu1 %112  ;;  %v111_v35 = vpop.permute.xlu0 %110 }
 0x10d   :  { %v118_v42 = vsel %vm114_vm3, %v113_v34, 0.0  ;;  %v115_v43 = vsel %vm114_vm3, %v111_v35, %v113_v34 }
 0x10e   :  { %v120_v46 = vadd.f32 %v118_v42, %v109_v45  ;;  %v119_v47 = vadd.f32 %v115_v43, %v108_v44 }
 0x110   :  { %v126_v40 = vpop.permute.xlu1 %125  ;;  %v124_v41 = vpop.permute.xlu0 %123  ;;  %v142_v56 = vmul.f32 %v120_v46, %v120_v46  ;;  %v141_v57 = vmul.f32 %v119_v47, %v119_v47 }
 0x111   :  { %v130_v50 = vsel %vm114_vm3, %v126_v40, 0.0  ;;  %v127_v51 = vsel %vm114_vm3, %v124_v41, %v126_v40 }
 0x114   :  { %v134_v48 = vpop.permute.xlu1 %133  ;;  %v132_v49 = vpop.permute.xlu0 %131 }
 0x115   :  { %v135_v52 = vsel %vm101_vm2, %v132_v49, %v134_v48  ;;  %v138_v53 = vsel %vm101_vm2, 0.0, %v132_v49 }
 0x116   :  { %v139_v54 = vsub.f32 %v127_v51, %v138_v53  ;;  %v140_v55 = vsub.f32 %v130_v50, %v135_v52 }
 0x118   :  { %v143_v58 = vmul.f32 %v139_v54, %v139_v54  ;;  %v144_v59 = vmul.f32 %v140_v55, %v140_v55 }
 0x11a   :  { %v145_v60 = vadd.f32 %v143_v58, %v141_v57  ;;  %v146_v61 = vadd.f32 %v144_v59, %v142_v56 }
 0x11c   :  { %186 = vrsqrt.f32 %v145_v60  ;;  %vm149_vm4 = vcmp.eq.f32.partialorder %v145_v60, inf  ;;  %v152_v1 = vand.u32 2147483648, %v145_v60  ;;  %vm151_vm5 = vcmp.eq.f32.partialorder %v145_v60, 0.0 }
 0x11d   :  { %188 = vrsqrt.f32 %v146_v61  ;;  %vm156_vm6 = vcmp.eq.f32.partialorder %v146_v61, inf  ;;  %v159_v4 = vand.u32 2147483648, %v146_v61  ;;  %vm158_vm7 = vcmp.eq.f32.partialorder %v146_v61, 0.0 }
 0x129   :  { %v187_v62 = vpop.eup %186 }
 0x12a   :  { %v189_v63 = vpop.eup %188  ;;  %v148_v0 = vmul.f32 %v187_v62, %v145_v60 }
 0x12b   :  { %v155_v2 = vmul.f32 %v189_v63, %v146_v61 }
 0x12c   :  { %v150_v3 = vsel %vm149_vm4, %v145_v60, %v148_v0 }
 0x12d   :  { %v153_v5 = vsel %vm151_vm5, %v152_v1, %v150_v3  ;;  %v157_v6 = vsel %vm156_vm6, %v146_v61, %v155_v2 }
 0x12e   :  { %v160_v7 = vsel %vm158_vm7, %v159_v4, %v157_v6  ;;  %161 = vst [vmem:[#allocation7] sm:$0xff] %v153_v5 }
 0x12f   :  { %162 = vst [vmem:[#allocation7 + $0x8] sm:$0xff] %v160_v7 }
 0x130   :  { %241 = shalt.err (!%p238_p0)
}
 0x131   :  { %172 = dma.vmem_to_hbm [thread:$0]  %s170_s22, 256, %s297_s2, [#allocation4]  }
 0x132   :  { %254 = dma.done.wait [#allocation4], 256  }
 0x133   :  { %255 = vsyncadd [#allocation4], 4294967040 }
 0x134   :  { %176 = vsyncpa [#allocation3], 1 }
 0x135   :  { %177 = vsyncpa [#allocation6], 1 }
 0x136   :  { %178 = vsyncpa [#allocation4], 1 }

</bundles_post_ra>
